<compile_context>
chip_gen: v7x
topology: tpu7x:2x2x1
jax: 0.10.0
libtpu: 0.0.40
codegen_flags: <defaults>
</compile_context>

<pallas_src>
import jax
import jax.numpy as jnp
from jax.experimental import pallas as pl
from jax.experimental.pallas import tpu as pltpu


_LANE_BLOCK = 512      # lane-slab width (multiple of 128)
_MAX_TILE_ROWS = 256   # 3 * 256 * 512 * 4 B = 1.5 MiB per block


# ----------------------------------------------------------------------------
# Kernel (SoA slabs): out[j] = x*sR[0,j] + y*sR[1,j] + z*sR[2,j] + st[j]
#   params_ref (SMEM, (12,)): sR row-major [0:9], st [9:12]
#   pts_ref / out_ref: VMEM blocks of shape (3, tile_rows, L)
# ----------------------------------------------------------------------------
def _register_kernel(params_ref, pts_ref, out_ref):
    # Hoist the 12 SMEM scalar reads (and their implicit broadcasts) out of
    # the unrolled plane loop — once per grid step.
    p = [params_ref[k] for k in range(12)]
    x = pts_ref[0]   # (tile_rows, L) lane/sublane-dense slab
    y = pts_ref[1]
    z = pts_ref[2]
    for j in range(3):  # static unroll over output xyz planes (dense stores)
        out_ref[j] = x * p[j] + y * p[3 + j] + z * p[6 + j] + p[9 + j]


def _build_rotation(rx, ry, rz):
    """Plain-JAX glue: compose R = Rz @ Ry @ Rx exactly as the PyTorch module."""
    cx, sx = jnp.cos(rx), jnp.sin(rx)
    cy, sy = jnp.cos(ry), jnp.sin(ry)
    cz, sz = jnp.cos(rz), jnp.sin(rz)
    one = jnp.float32(1.0)
    zero = jnp.float32(0.0)
    Rx = jnp.array([[one, zero, zero],
                    [zero, cx, -sx],
                    [zero, sx, cx]], dtype=jnp.float32)
    Ry = jnp.array([[cy, zero, sy],
                    [zero, one, zero],
                    [-sy, zero, cy]], dtype=jnp.float32)
    Rz = jnp.array([[cz, -sz, zero],
                    [sz, cz, zero],
                    [zero, zero, one]], dtype=jnp.float32)
    return Rz @ (Ry @ Rx)


def point_cloud_registration_forward(source_points, rotation_x, rotation_y,
                                     rotation_z, translation, scale,
                                     *, max_tile_rows=_MAX_TILE_ROWS):
    """source_points: [N, 3] f32. Returns scale * (source_points @ R + t), [N, 3]."""
    N, D = source_points.shape
    assert D == 3
    source_points = source_points.astype(jnp.float32)

    # Compose rotation and fold scale into R and t (12 params total).
    R = _build_rotation(rotation_x[0], rotation_y[0], rotation_z[0])
    s = scale.reshape(-1)[0].astype(jnp.float32)
    sR = (R * s).astype(jnp.float32)                               # (3, 3)
    st = (translation.reshape(-1).astype(jnp.float32) * s)         # (3,)
    params = jnp.concatenate([sR.reshape(-1), st]).astype(jnp.float32)  # (12,)

    # SoA layout: [3, N]; pad N only up to one lane slab, then split the minor
    # dim into (rows, L) so the kernel sees sublane/lane-dense slabs.
    L = _LANE_BLOCK
    pts_t = source_points.T                       # (3, N)
    n_pad = ((N + L - 1) // L) * L
    if n_pad != N:
        pts_t = jnp.pad(pts_t, ((0, 0), (0, n_pad - N)))
    rows = n_pad // L
    pts3 = pts_t.reshape(3, rows, L)              # free minor-dim split

    # Tile rows: whole rows dim if it fits one block, else a multiple-of-8 row
    # tile (~1.5 MiB default) so partial edge blocks stay (8,128)-legal and
    # the grid has multiple steps for megacore sharding on large inputs.
    if rows <= max_tile_rows:
        tile_rows = rows
    else:
        tile_rows = max(8, (max_tile_rows // 8) * 8)

    grid = (pl.cdiv(rows, tile_rows),)            # ragged last block is masked by Pallas

    out3 = pl.pallas_call(
        _register_kernel,
        out_shape=jax.ShapeDtypeStruct((3, rows, L), jnp.float32),
        grid_spec=pltpu.PrefetchScalarGridSpec(
            num_scalar_prefetch=0,
            grid=grid,
            in_specs=[
                pl.BlockSpec(memory_space=pltpu.MemorySpace.SMEM),      # params (12,)
                pl.BlockSpec((3, tile_rows, L), lambda i: (0, i, 0)),   # points SoA
            ],
            out_specs=pl.BlockSpec((3, tile_rows, L), lambda i: (0, i, 0)),
        ),
        compiler_params=pltpu.CompilerParams(
            dimension_semantics=("parallel",)),   # independent blocks; shardable on v7x
    )(params, pts3)

    # Drop lane padding, back to the module's [N, 3] layout.
    return out3.reshape(3, n_pad)[:, :N].T


def _reference(source_points, rotation_x, rotation_y, rotation_z,
               translation, scale):
    R = _build_rotation(rotation_x[0], rotation_y[0], rotation_z[0])
    out = source_points @ R + translation
    return out * scale[0]


if __name__ == "__main__":
    key = jax.random.PRNGKey(0)
    k_pts, k_rx, k_ry, k_rz, k_t = jax.random.split(key, 5)

    # Ragged N: pads 10000 -> 10240 cols -> 20 row-slabs of 512 lanes.
    N = 10_000
    source_points = jax.random.normal(k_pts, (N, 3), dtype=jnp.float32)

    # Module __init__ uses zeros/ones; use small deterministic non-trivial
    # values so the kernel compute path is actually exercised.
    rotation_x = jax.random.uniform(k_rx, (1,), minval=-0.5, maxval=0.5).astype(jnp.float32)
    rotation_y = jax.random.uniform(k_ry, (1,), minval=-0.5, maxval=0.5).astype(jnp.float32)
    rotation_z = jax.random.uniform(k_rz, (1,), minval=-0.5, maxval=0.5).astype(jnp.float32)
    translation = (jax.random.normal(k_t, (3,), dtype=jnp.float32) * 0.1).astype(jnp.float32)
    scale = jnp.full((1,), 1.25, dtype=jnp.float32)

    ref = _reference(source_points, rotation_x, rotation_y, rotation_z,
                     translation, scale)

    # 1) Default tiling: whole (3, 20, 512) array in one block / one grid step.
    out = point_cloud_registration_forward(
        source_points, rotation_x, rotation_y, rotation_z, translation, scale)
    out = jax.block_until_ready(out)
    assert out.shape == (N, 3)
    assert jnp.allclose(out, ref, atol=1e-5, rtol=1e-5), "mismatch (single block)"

    # 2) Multi-step tiling with a ragged last block (rows=20, tile_rows=8 ->
    #    grid=3, last block only 4 valid rows) to exercise Pallas edge masking.
    out2 = point_cloud_registration_forward(
        source_points, rotation_x, rotation_y, rotation_z, translation, scale,
        max_tile_rows=8)
    out2 = jax.block_until_ready(out2)
    assert jnp.allclose(out2, ref, atol=1e-5, rtol=1e-5), "mismatch (ragged grid)"

    print("KERNEL_OK")
</pallas_src>

<mosaic_0001>
module attributes {stable_mosaic.version = 11 : i64} {
  func.func @_register_kernel(%arg0: i32, %arg1: memref<12xf32, #tpu.memory_space<smem>>, %arg2: memref<3x20x512xf32, #tpu.memory_space<vmem>>, %arg3: memref<3x20x512xf32, #tpu.memory_space<vmem>>) attributes {dimension_semantics = [#tpu.dimension_semantics<parallel>], iteration_bounds = array<i64: 1>, scalar_prefetch = 0 : i64, scratch_operands = 0 : i64, tpu.core_type = #tpu.core_type<tc>, window_params = [{transform_indices = @transform_0, window_bounds = array<i64: 12>}, {transform_indices = @transform_1, window_bounds = array<i64: 3, 20, 512>}, {transform_indices = @transform_2, window_bounds = array<i64: 3, 20, 512>}]} {
    %c0 = arith.constant 0 : index
    %0 = memref.load %arg1[%c0] : memref<12xf32, #tpu.memory_space<smem>>
    %c1 = arith.constant 1 : index
    %1 = memref.load %arg1[%c1] : memref<12xf32, #tpu.memory_space<smem>>
    %c2 = arith.constant 2 : index
    %2 = memref.load %arg1[%c2] : memref<12xf32, #tpu.memory_space<smem>>
    %c3 = arith.constant 3 : index
    %3 = memref.load %arg1[%c3] : memref<12xf32, #tpu.memory_space<smem>>
    %c4 = arith.constant 4 : index
    %4 = memref.load %arg1[%c4] : memref<12xf32, #tpu.memory_space<smem>>
    %c5 = arith.constant 5 : index
    %5 = memref.load %arg1[%c5] : memref<12xf32, #tpu.memory_space<smem>>
    %c6 = arith.constant 6 : index
    %6 = memref.load %arg1[%c6] : memref<12xf32, #tpu.memory_space<smem>>
    %c7 = arith.constant 7 : index
    %7 = memref.load %arg1[%c7] : memref<12xf32, #tpu.memory_space<smem>>
    %c8 = arith.constant 8 : index
    %8 = memref.load %arg1[%c8] : memref<12xf32, #tpu.memory_space<smem>>
    %c9 = arith.constant 9 : index
    %9 = memref.load %arg1[%c9] : memref<12xf32, #tpu.memory_space<smem>>
    %c10 = arith.constant 10 : index
    %10 = memref.load %arg1[%c10] : memref<12xf32, #tpu.memory_space<smem>>
    %c11 = arith.constant 11 : index
    %11 = memref.load %arg1[%c11] : memref<12xf32, #tpu.memory_space<smem>>
    %c0_0 = arith.constant 0 : index
    %c0_1 = arith.constant 0 : index
    %c0_2 = arith.constant 0 : index
    %12 = vector.load %arg2[%c0_0, %c0_1, %c0_2] : memref<3x20x512xf32, #tpu.memory_space<vmem>>, vector<1x20x512xf32>
    %13 = vector.shape_cast %12 : vector<1x20x512xf32> to vector<20x512xf32>
    %c1_3 = arith.constant 1 : index
    %c0_4 = arith.constant 0 : index
    %c0_5 = arith.constant 0 : index
    %14 = vector.load %arg2[%c1_3, %c0_4, %c0_5] : memref<3x20x512xf32, #tpu.memory_space<vmem>>, vector<1x20x512xf32>
    %15 = vector.shape_cast %14 : vector<1x20x512xf32> to vector<20x512xf32>
    %c2_6 = arith.constant 2 : index
    %c0_7 = arith.constant 0 : index
    %c0_8 = arith.constant 0 : index
    %16 = vector.load %arg2[%c2_6, %c0_7, %c0_8] : memref<3x20x512xf32, #tpu.memory_space<vmem>>, vector<1x20x512xf32>
    %17 = vector.shape_cast %16 : vector<1x20x512xf32> to vector<20x512xf32>
    %18 = vector.broadcast %0 : f32 to vector<20x512xf32>
    %19 = arith.mulf %13, %18 : vector<20x512xf32>
    %20 = vector.broadcast %3 : f32 to vector<20x512xf32>
    %21 = arith.mulf %15, %20 : vector<20x512xf32>
    %22 = arith.addf %19, %21 : vector<20x512xf32>
    %23 = vector.broadcast %6 : f32 to vector<20x512xf32>
    %24 = arith.mulf %17, %23 : vector<20x512xf32>
    %25 = arith.addf %22, %24 : vector<20x512xf32>
    %26 = vector.broadcast %9 : f32 to vector<20x512xf32>
    %27 = arith.addf %25, %26 : vector<20x512xf32>
    %c0_9 = arith.constant 0 : index
    %c0_10 = arith.constant 0 : index
    %c0_11 = arith.constant 0 : index
    %28 = vector.load %arg3[%c0_9, %c0_10, %c0_11] : memref<3x20x512xf32, #tpu.memory_space<vmem>>, vector<1x20x512xf32>
    %29 = vector.shape_cast %28 : vector<1x20x512xf32> to vector<20x512xf32>
    %30 = vector.shape_cast %27 : vector<20x512xf32> to vector<1x20x512xf32>
    tpu.vector_store %arg3[%c0_9, %c0_10, %c0_11], %30 {strides = array<i32>} : memref<3x20x512xf32, #tpu.memory_space<vmem>>, vector<1x20x512xf32>,
    %31 = vector.broadcast %1 : f32 to vector<20x512xf32>
    %32 = arith.mulf %13, %31 : vector<20x512xf32>
    %33 = vector.broadcast %4 : f32 to vector<20x512xf32>
    %34 = arith.mulf %15, %33 : vector<20x512xf32>
    %35 = arith.addf %32, %34 : vector<20x512xf32>
    %36 = vector.broadcast %7 : f32 to vector<20x512xf32>
    %37 = arith.mulf %17, %36 : vector<20x512xf32>
    %38 = arith.addf %35, %37 : vector<20x512xf32>
    %39 = vector.broadcast %10 : f32 to vector<20x512xf32>
    %40 = arith.addf %38, %39 : vector<20x512xf32>
    %c1_12 = arith.constant 1 : index
    %c0_13 = arith.constant 0 : index
    %c0_14 = arith.constant 0 : index
    %41 = vector.load %arg3[%c1_12, %c0_13, %c0_14] : memref<3x20x512xf32, #tpu.memory_space<vmem>>, vector<1x20x512xf32>
    %42 = vector.shape_cast %41 : vector<1x20x512xf32> to vector<20x512xf32>
    %43 = vector.shape_cast %40 : vector<20x512xf32> to vector<1x20x512xf32>
    tpu.vector_store %arg3[%c1_12, %c0_13, %c0_14], %43 {strides = array<i32>} : memref<3x20x512xf32, #tpu.memory_space<vmem>>, vector<1x20x512xf32>,
    %44 = vector.broadcast %2 : f32 to vector<20x512xf32>
    %45 = arith.mulf %13, %44 : vector<20x512xf32>
    %46 = vector.broadcast %5 : f32 to vector<20x512xf32>
    %47 = arith.mulf %15, %46 : vector<20x512xf32>
    %48 = arith.addf %45, %47 : vector<20x512xf32>
    %49 = vector.broadcast %8 : f32 to vector<20x512xf32>
    %50 = arith.mulf %17, %49 : vector<20x512xf32>
    %51 = arith.addf %48, %50 : vector<20x512xf32>
    %52 = vector.broadcast %11 : f32 to vector<20x512xf32>
    %53 = arith.addf %51, %52 : vector<20x512xf32>
    %c2_15 = arith.constant 2 : index
    %c0_16 = arith.constant 0 : index
    %c0_17 = arith.constant 0 : index
    %54 = vector.load %arg3[%c2_15, %c0_16, %c0_17] : memref<3x20x512xf32, #tpu.memory_space<vmem>>, vector<1x20x512xf32>
    %55 = vector.shape_cast %54 : vector<1x20x512xf32> to vector<20x512xf32>
    %56 = vector.shape_cast %53 : vector<20x512xf32> to vector<1x20x512xf32>
    tpu.vector_store %arg3[%c2_15, %c0_16, %c0_17], %56 {strides = array<i32>} : memref<3x20x512xf32, #tpu.memory_space<vmem>>, vector<1x20x512xf32>,
    return
  }
  func.func @transform_0(%arg0: i32) -> i32 {
    %c0_i32 = arith.constant 0 : i32
    %c0_i32_0 = arith.constant 0 : i32
    return %c0_i32 : i32
  }
  func.func @transform_1(%arg0: i32) -> (i32, i32, i32) {
    %c0_i32 = arith.constant 0 : i32
    %c0_i32_0 = arith.constant 0 : i32
    %c0_i32_1 = arith.constant 0 : i32
    return %c0_i32, %arg0, %c0_i32_0 : i32, i32, i32
  }
  func.func @transform_2(%arg0: i32) -> (i32, i32, i32) {
    %c0_i32 = arith.constant 0 : i32
    %c0_i32_0 = arith.constant 0 : i32
    %c0_i32_1 = arith.constant 0 : i32
    return %c0_i32, %arg0, %c0_i32_0 : i32, i32, i32
  }
}

</mosaic_0001>

<bundles_post_ra>
// kernel: tpu_custom_call.1
= control target key start
LH: loop header
LB: loop body
LE: loop exit
PB: predicated region body
PF: predicated region fallthrough
CT: control target
= control target key end

     0   :  { %7 = vsyncpa [#allocation5], 0  ;;  %s881_s0 = inlined_call_operand.hbm [shape: f32[12], index: 0, kind: input, shape index: {}]   ;;  %s882_s1 = inlined_call_operand.hbm [shape: f32[3,20,512], index: 1, kind: input, shape index: {}]   ;;  %s883_s2 = inlined_call_operand.hbm [shape: f32[3,20,512], index: 2, kind: output, shape index: {}]  }
   0x1   :  { %8 = vsyncpa [#allocation3], 0 }
   0x2   :  { %9 = vsyncpa [#allocation4], 0  ;;  %s387_s11 = scalar_lea.hbm %s881_s0, 16 }
   0x3   :  { %p388_p0 = scmp.ne.s32.totalorder %s881_s0, %s387_s11  ;;  %p391_p1 = scmp.lt.u32.totalorder %s387_s11, %s881_s0 }
   0x5   :  { %p393_p2 = pnand %p391_p1, %p388_p0 }
   0x7   :  { %396 = shalt.err (!%p393_p2)
}
   0x8   :  { %s447_s16 = smov [#allocation2]   ;;  %s448_s19 = smov [#allocation6]  }
   0x9   :  { %17 = dma.hbm_to_smem %s881_s0, 16, %s447_s16, [#allocation5]  }
   0xa   :  { %s23_s20 = sshll.u32 %s448_s19, 4  ;;  %s397_s23 = scalar_lea.hbm %s882_s1, 4608  ;;  %s24_s20 = int_to_ptr.vmem [resolvable:$true] %s23_s20 }
   0xb   :  { %p398_p3 = scmp.ne.s32.totalorder %s882_s1, %s397_s23  ;;  %p401_p4 = scmp.lt.u32.totalorder %s397_s23, %s882_s1 }
   0xd   :  { %p403_p5 = pnand %p401_p4, %p398_p3 }
   0xf   :  { %406 = shalt.err (!%p403_p5)
}
  0x10   :  { %s407_s28 = scalar_lea.vmem %s24_s20, 4608  ;;  %p412_p7 = scmp.lt.s32.totalorder %s24_s20, %s24_s20 }
  0x11   :  { %p408_p6 = scmp.ne.s32.totalorder %s24_s20, %s407_s28  ;;  %p413_p8 = scmp.lt.s32.totalorder %s407_s28, %s407_s28 }
  0x13   :  { %p414_p9 = por %p413_p8, %p412_p7 }
  0x15   :  { %p415_p10 = pnand %p414_p9, %p408_p6 }
  0x17   :  { %418 = shalt.err (!%p415_p10)
}
  0x18   :  { %s449_s0 = smov 512   ;;  %s450_s29 = smov 32  }
  0x19   :  { %29 = dma.hbm_to_vmem [thread:$0]  %s882_s1, 4608, %s24_s20, [#allocation3], %s449_s0, %s449_s0, %s450_s29  }
  0x1a   :  { %441 = dma.done.wait [#allocation5], 16  }
  0x1b   :  { %442 = vsyncadd [#allocation5], 4294967280 }
  0x1c   :  { %443 = dma.done.wait [#allocation3], 4608  }
  0x1d   :  { %444 = vsyncadd [#allocation3], 4294962688 }
  0x1e   :  { %36 = sfence }
  0x1f   :  { %s37_s4 = sld [smem:[#allocation2]]  ;;  %s373_s5 = sld [smem:[#allocation2 + $0x3]]  ;;  %v494_v0 = vld [vmem:[#allocation6] sm:$0xff]  ;;  %v500_v3 = vld [vmem:[#allocation6 + $0x8] sm:$0xff]  ;;  %v510_v8 = vld [vmem:[#allocation6 + $0x10] sm:$0xff] }
  0x20   :  { %s376_s6 = sld [smem:[#allocation2 + $0x6]]  ;;  %s379_s7 = sld [smem:[#allocation2 + $0x9]]  ;;  %v496_v1 = vld [vmem:[#allocation6 + $0x60] sm:$0xff]  ;;  %v502_v4 = vld [vmem:[#allocation6 + $0x68] sm:$0xff]  ;;  %v512_v9 = vld [vmem:[#allocation6 + $0x70] sm:$0xff] }
  0x21   :  { %v498_v2 = vld [vmem:[#allocation6 + $0xc0] sm:$0xff]  ;;  %v504_v5 = vld [vmem:[#allocation6 + $0xc8] sm:$0xff]  ;;  %v514_v10 = vld [vmem:[#allocation6 + $0xd0] sm:$0xff]  ;;  %s590_s1 = sld [smem:[#allocation2 + $0x1]]  ;;  %s612_s8 = sld [smem:[#allocation2 + $0x4]] }
  0x22   :  { %v524_v15 = vld [vmem:[#allocation6 + $0x18] sm:$0xff]  ;;  %v538_v22 = vld [vmem:[#allocation6 + $0x20] sm:$0xff]  ;;  %v550_v29 = vld [vmem:[#allocation6 + $0x28] sm:$0xff]  ;;  %s621_s9 = sld [smem:[#allocation2 + $0x7]]  ;;  %s633_s10 = sld [smem:[#allocation2 + $0xa]] }
  0x23   :  { %v526_v16 = vld [vmem:[#allocation6 + $0x78] sm:$0xff]  ;;  %v540_v23 = vld [vmem:[#allocation6 + $0x80] sm:$0xff]  ;;  %v558_v34 = vld [vmem:[#allocation6 + $0x88] sm:$0xff]  ;;  %s721_s11 = sld [smem:[#allocation2 + $0x2]]  ;;  %s730_s12 = sld [smem:[#allocation2 + $0x5]] }
  0x24   :  { %v528_v17 = vld [vmem:[#allocation6 + $0xd8] sm:$0xff]  ;;  %v548_v28 = vld [vmem:[#allocation6 + $0xe0] sm:$0xff]  ;;  %v564_v39 = vld [vmem:[#allocation6 + $0xe8] sm:$0xff]  ;;  %s735_s13 = sld [smem:[#allocation2 + $0x8]]  ;;  %s743_s14 = sld [smem:[#allocation2 + $0xb]] }
  0x25   :  { %v506_v6 = vstv %s37_s4  ;;  %v508_v7 = vstv %s373_s5  ;;  %v566_v40 = vld [vmem:[#allocation6 + $0x30] sm:$0xff]  ;;  %v579_v51 = vld [vmem:[#allocation6 + $0x38] sm:$0xff]  ;;  %v595_v62 = vld [vmem:[#allocation6 + $0x40] sm:$0xf]  ;;  %s451_s15 = smov [#allocation7]  }
  0x26   :  { %v88_v11 = vmul.f32 %v506_v6, %v494_v0  ;;  %v101_v12 = vmul.f32 %v508_v7, %v496_v1  ;;  %v520_v13 = vstv %s376_s6  ;;  %v522_v14 = vstv %s379_s7  ;;  %v572_v45 = vld [vmem:[#allocation6 + $0x90] sm:$0xff]  ;;  %v581_v52 = vld [vmem:[#allocation6 + $0x98] sm:$0xff]  ;;  %v597_v63 = vld [vmem:[#allocation6 + $0xa0] sm:$0xf]  ;;  %s358_s16 = sshll.u32 %s451_s15, 4  ;;  %s359_s16 = int_to_ptr.vmem [resolvable:$true] %s358_s16 }
  0x27   :  { %v126_v18 = vmul.f32 %v520_v13, %v498_v2  ;;  %v89_v19 = vmul.f32 %v506_v6, %v500_v3  ;;  %v102_v20 = vmul.f32 %v508_v7, %v502_v4  ;;  %v127_v21 = vmul.f32 %v520_v13, %v504_v5  ;;  %v577_v50 = vld [vmem:[#allocation6 + $0xf0] sm:$0xff]  ;;  %v588_v57 = vld [vmem:[#allocation6 + $0xf8] sm:$0xff]  ;;  %s419_s17 = scalar_lea.vmem %s359_s16, 4608  ;;  %p424_p12 = scmp.lt.s32.totalorder %s359_s16, %s359_s16 }
  0x28   :  { %v113_v24 = vadd.f32 %v101_v12, %v88_v11  ;;  %v90_v25 = vmul.f32 %v506_v6, %v510_v8  ;;  %v103_v26 = vmul.f32 %v508_v7, %v512_v9  ;;  %v128_v27 = vmul.f32 %v520_v13, %v514_v10  ;;  %v599_v11 = vld [vmem:[#allocation6 + $0x100] sm:$0xf]  ;;  %p420_p11 = scmp.ne.s32.totalorder %s359_s16, %s419_s17  ;;  %p425_p13 = scmp.lt.s32.totalorder %s419_s17, %s419_s17 }
  0x29   :  { %v114_v30 = vadd.f32 %v102_v20, %v89_v19  ;;  %v91_v31 = vmul.f32 %v506_v6, %v524_v15  ;;  %v104_v32 = vmul.f32 %v508_v7, %v526_v16  ;;  %v129_v33 = vmul.f32 %v520_v13, %v528_v17 }
  0x2a   :  { %v138_v35 = vadd.f32 %v126_v18, %v113_v24  ;;  %v115_v36 = vadd.f32 %v103_v26, %v90_v25  ;;  %v92_v37 = vmul.f32 %v506_v6, %v538_v22  ;;  %v105_v38 = vmul.f32 %v508_v7, %v540_v23  ;;  %v610_v24 = vld [vmem:[#allocation6 + $0xa8] sm:$0xf]  ;;  %p426_p0 = por %p425_p13, %p424_p12 }
  0x2b   :  { %v139_v41 = vadd.f32 %v127_v21, %v114_v30  ;;  %v116_v42 = vadd.f32 %v104_v32, %v91_v31  ;;  %v130_v43 = vmul.f32 %v520_v13, %v548_v28  ;;  %v93_v44 = vmul.f32 %v506_v6, %v550_v29  ;;  %v608_v21 = vld [vmem:[#allocation6 + $0x48] sm:$0xf]  ;;  %v619_v32 = vld [vmem:[#allocation6 + $0x50] sm:$0xf] }
  0x2c   :  { %v151_v46 = vadd.f32 %v522_v14, %v138_v35  ;;  %v140_v47 = vadd.f32 %v128_v27, %v115_v36  ;;  %v117_v48 = vadd.f32 %v105_v38, %v92_v37  ;;  %v106_v49 = vmul.f32 %v508_v7, %v558_v34  ;;  %v617_v31 = vld [vmem:[#allocation6 + $0x108] sm:$0xf]  ;;  %v629_v38 = vld [vmem:[#allocation6 + $0xb0] sm:$0xf]  ;;  %p427_p1 = pnand %p426_p0, %p420_p11 }
  0x2d   :  { %v152_v53 = vadd.f32 %v522_v14, %v139_v41  ;;  %v141_v54 = vadd.f32 %v129_v33, %v116_v42  ;;  %v131_v55 = vmul.f32 %v520_v13, %v564_v39  ;;  %v94_v56 = vmul.f32 %v506_v6, %v566_v40  ;;  %v631_v41 = vld [vmem:[#allocation6 + $0x110] sm:$0xf] }
  0x2e   :  { %163 = vst [vmem:[#allocation7] sm:$0xff] %v151_v46  ;;  %v153_v58 = vadd.f32 %v522_v14, %v140_v47  ;;  %v142_v59 = vadd.f32 %v130_v43, %v117_v48  ;;  %v118_v60 = vadd.f32 %v106_v49, %v93_v44  ;;  %v107_v61 = vmul.f32 %v508_v7, %v572_v45  ;;  %v640_v47 = vld [vmem:[#allocation6 + $0x58] sm:$0xf] }
  0x2f   :  { %164 = vst [vmem:[#allocation7 + $0x8] sm:$0xff] %v152_v53  ;;  %v154_v12 = vadd.f32 %v522_v14, %v141_v54  ;;  %v132_v18 = vmul.f32 %v520_v13, %v577_v50  ;;  %v95_v19 = vmul.f32 %v506_v6, %v579_v51  ;;  %v108_v20 = vmul.f32 %v508_v7, %v581_v52  ;;  %v642_v48 = vld [vmem:[#allocation6 + $0xb8] sm:$0xf] }
  0x30   :  { %165 = vst [vmem:[#allocation7 + $0x10] sm:$0xff] %v153_v58  ;;  %v155_v25 = vadd.f32 %v522_v14, %v142_v59  ;;  %v143_v26 = vadd.f32 %v131_v55, %v118_v60  ;;  %v119_v27 = vadd.f32 %v107_v61, %v94_v56  ;;  %v133_v30 = vmul.f32 %v520_v13, %v588_v57  ;;  %v648_v56 = vld [vmem:[#allocation6 + $0x118] sm:$0xf] }
  0x31   :  { %166 = vst [vmem:[#allocation7 + $0x18] sm:$0xff] %v154_v12  ;;  %v120_v33 = vadd.f32 %v108_v20, %v95_v19  ;;  %v96_v35 = vmul.f32 %v506_v6, %v595_v62  ;;  %v109_v36 = vmul.f32 %v508_v7, %v597_v63  ;;  %v134_v37 = vmul.f32 %v520_v13, %v599_v11 }
  0x32   :  { %167 = vst [vmem:[#allocation7 + $0x20] sm:$0xff] %v155_v25  ;;  %v156_v42 = vadd.f32 %v522_v14, %v143_v26  ;;  %v144_v43 = vadd.f32 %v132_v18, %v119_v27  ;;  %v97_v44 = vmul.f32 %v506_v6, %v608_v21  ;;  %v110_v46 = vmul.f32 %v508_v7, %v610_v24 }
  0x33   :  { %v145_v49 = vadd.f32 %v133_v30, %v120_v33  ;;  %v121_v53 = vadd.f32 %v109_v36, %v96_v35  ;;  %v135_v54 = vmul.f32 %v520_v13, %v617_v31  ;;  %v98_v55 = vmul.f32 %v506_v6, %v619_v32 }
  0x34   :  { %168 = vst [vmem:[#allocation7 + $0x28] sm:$0xff] %v156_v42  ;;  %v157_v58 = vadd.f32 %v522_v14, %v144_v43  ;;  %v122_v59 = vadd.f32 %v110_v46, %v97_v44  ;;  %v111_v60 = vmul.f32 %v508_v7, %v629_v38  ;;  %v136_v61 = vmul.f32 %v520_v13, %v631_v41 }
  0x35   :  { %v158_v12 = vadd.f32 %v522_v14, %v145_v49  ;;  %v146_v18 = vadd.f32 %v134_v37, %v121_v53  ;;  %v99_v19 = vmul.f32 %v506_v6, %v640_v47  ;;  %v112_v20 = vmul.f32 %v508_v7, %v642_v48 }
  0x36   :  { %169 = vst [vmem:[#allocation7 + $0x30] sm:$0xff] %v157_v58  ;;  %v147_v25 = vadd.f32 %v135_v54, %v122_v59  ;;  %v123_v26 = vadd.f32 %v111_v60, %v98_v55  ;;  %v137_v27 = vmul.f32 %v520_v13, %v648_v56  ;;  %v663_v30 = vstv %s590_s1 }
  0x37   :  { %170 = vst [vmem:[#allocation7 + $0x38] sm:$0xff] %v158_v12  ;;  %v159_v33 = vadd.f32 %v522_v14, %v146_v18  ;;  %v124_v35 = vadd.f32 %v112_v20, %v99_v19  ;;  %v176_v36 = vmul.f32 %v663_v30, %v494_v0  ;;  %v669_v6 = vstv %s612_s8 }
  0x38   :  { %v160_v7 = vadd.f32 %v522_v14, %v147_v25  ;;  %v148_v37 = vadd.f32 %v136_v61, %v123_v26  ;;  %v189_v42 = vmul.f32 %v669_v6, %v496_v1  ;;  %v675_v43 = vstv %s621_s9 }
  0x39   :  { %171 = vst [vmem:[#allocation7 + $0x40] sm:$0xf] %v159_v33  ;;  %v149_v13 = vadd.f32 %v137_v27, %v124_v35  ;;  %v214_v44 = vmul.f32 %v675_v43, %v498_v2  ;;  %v680_v46 = vstv %s633_s10  ;;  %v177_v49 = vmul.f32 %v663_v30, %v500_v3 }
  0x3a   :  { %172 = vst [vmem:[#allocation7 + $0x48] sm:$0xf] %v160_v7  ;;  %v161_v53 = vadd.f32 %v522_v14, %v148_v37  ;;  %v201_v54 = vadd.f32 %v189_v42, %v176_v36  ;;  %v190_v55 = vmul.f32 %v669_v6, %v502_v4  ;;  %v215_v58 = vmul.f32 %v675_v43, %v504_v5 }
  0x3b   :  { %v162_v59 = vadd.f32 %v522_v14, %v149_v13  ;;  %v178_v60 = vmul.f32 %v663_v30, %v510_v8  ;;  %v191_v61 = vmul.f32 %v669_v6, %v512_v9  ;;  %v216_v12 = vmul.f32 %v675_v43, %v514_v10 }
  0x3c   :  { %173 = vst [vmem:[#allocation7 + $0x50] sm:$0xf] %v161_v53  ;;  %v226_v18 = vadd.f32 %v214_v44, %v201_v54  ;;  %v202_v19 = vadd.f32 %v190_v55, %v177_v49  ;;  %v179_v20 = vmul.f32 %v663_v30, %v524_v15  ;;  %v192_v25 = vmul.f32 %v669_v6, %v526_v16 }
  0x3d   :  { %174 = vst [vmem:[#allocation7 + $0x58] sm:$0xf] %v162_v59  ;;  %v203_v14 = vadd.f32 %v191_v61, %v178_v60  ;;  %v217_v26 = vmul.f32 %v675_v43, %v528_v17  ;;  %v180_v27 = vmul.f32 %v663_v30, %v538_v22  ;;  %v193_v33 = vmul.f32 %v669_v6, %v540_v23 }
  0x3e   :  { %v239_v35 = vadd.f32 %v680_v46, %v226_v18  ;;  %v227_v36 = vadd.f32 %v215_v58, %v202_v19  ;;  %v204_v7 = vadd.f32 %v192_v25, %v179_v20  ;;  %v218_v37 = vmul.f32 %v675_v43, %v548_v28 }
  0x3f   :  { %v228_v42 = vadd.f32 %v216_v12, %v203_v14  ;;  %v205_v13 = vadd.f32 %v193_v33, %v180_v27  ;;  %v181_v44 = vmul.f32 %v663_v30, %v550_v29  ;;  %v194_v49 = vmul.f32 %v669_v6, %v558_v34 }
  0x40   :  { %252 = vst [vmem:[#allocation7 + $0x60] sm:$0xff] %v239_v35  ;;  %v240_v53 = vadd.f32 %v680_v46, %v227_v36  ;;  %v229_v54 = vadd.f32 %v217_v26, %v204_v7  ;;  %v219_v55 = vmul.f32 %v675_v43, %v564_v39  ;;  %v182_v58 = vmul.f32 %v663_v30, %v566_v40 }
  0x41   :  { %v241_v59 = vadd.f32 %v680_v46, %v228_v42  ;;  %v230_v60 = vadd.f32 %v218_v37, %v205_v13  ;;  %v206_v61 = vadd.f32 %v194_v49, %v181_v44  ;;  %v195_v12 = vmul.f32 %v669_v6, %v572_v45 }
  0x42   :  { %253 = vst [vmem:[#allocation7 + $0x68] sm:$0xff] %v240_v53  ;;  %v242_v18 = vadd.f32 %v680_v46, %v229_v54  ;;  %v220_v19 = vmul.f32 %v675_v43, %v577_v50  ;;  %v183_v20 = vmul.f32 %v663_v30, %v579_v51  ;;  %v196_v25 = vmul.f32 %v669_v6, %v581_v52 }
  0x43   :  { %254 = vst [vmem:[#allocation7 + $0x70] sm:$0xff] %v241_v59  ;;  %v243_v14 = vadd.f32 %v680_v46, %v230_v60  ;;  %v231_v26 = vadd.f32 %v219_v55, %v206_v61  ;;  %v207_v27 = vadd.f32 %v195_v12, %v182_v58  ;;  %v221_v33 = vmul.f32 %v675_v43, %v588_v57 }
  0x44   :  { %255 = vst [vmem:[#allocation7 + $0x78] sm:$0xff] %v242_v18  ;;  %v208_v35 = vadd.f32 %v196_v25, %v183_v20  ;;  %v184_v36 = vmul.f32 %v663_v30, %v595_v62  ;;  %v197_v7 = vmul.f32 %v669_v6, %v597_v63  ;;  %v222_v37 = vmul.f32 %v675_v43, %v599_v11 }
  0x45   :  { %256 = vst [vmem:[#allocation7 + $0x80] sm:$0xff] %v243_v14  ;;  %v244_v42 = vadd.f32 %v680_v46, %v231_v26  ;;  %v232_v13 = vadd.f32 %v220_v19, %v207_v27  ;;  %v185_v44 = vmul.f32 %v663_v30, %v608_v21  ;;  %v198_v49 = vmul.f32 %v669_v6, %v610_v24 }
  0x46   :  { %v233_v53 = vadd.f32 %v221_v33, %v208_v35  ;;  %v209_v54 = vadd.f32 %v197_v7, %v184_v36  ;;  %v223_v55 = vmul.f32 %v675_v43, %v617_v31  ;;  %v186_v58 = vmul.f32 %v663_v30, %v619_v32 }
  0x47   :  { %257 = vst [vmem:[#allocation7 + $0x88] sm:$0xff] %v244_v42  ;;  %v245_v59 = vadd.f32 %v680_v46, %v232_v13  ;;  %v210_v60 = vadd.f32 %v198_v49, %v185_v44  ;;  %v199_v61 = vmul.f32 %v669_v6, %v629_v38  ;;  %v224_v12 = vmul.f32 %v675_v43, %v631_v41 }
  0x48   :  { %v246_v18 = vadd.f32 %v680_v46, %v233_v53  ;;  %v234_v19 = vadd.f32 %v222_v37, %v209_v54  ;;  %v187_v20 = vmul.f32 %v663_v30, %v640_v47  ;;  %v200_v25 = vmul.f32 %v669_v6, %v642_v48 }
  0x49   :  { %258 = vst [vmem:[#allocation7 + $0x90] sm:$0xff] %v245_v59  ;;  %v235_v14 = vadd.f32 %v223_v55, %v210_v60  ;;  %v211_v26 = vadd.f32 %v199_v61, %v186_v58  ;;  %v225_v27 = vmul.f32 %v675_v43, %v648_v56  ;;  %v767_v33 = vstv %s721_s11 }
  0x4a   :  { %259 = vst [vmem:[#allocation7 + $0x98] sm:$0xff] %v246_v18  ;;  %v247_v35 = vadd.f32 %v680_v46, %v234_v19  ;;  %v212_v36 = vadd.f32 %v200_v25, %v187_v20  ;;  %v265_v7 = vmul.f32 %v767_v33, %v494_v0  ;;  %v773_v30 = vstv %s730_s12 }
  0x4b   :  { %v248_v6 = vadd.f32 %v680_v46, %v235_v14  ;;  %v236_v37 = vadd.f32 %v224_v12, %v211_v26  ;;  %v278_v42 = vmul.f32 %v773_v30, %v496_v1  ;;  %v779_v13 = vstv %s735_s13 }
  0x4c   :  { %260 = vst [vmem:[#allocation7 + $0xa0] sm:$0xf] %v247_v35  ;;  %v237_v43 = vadd.f32 %v225_v27, %v212_v36  ;;  %v303_v44 = vmul.f32 %v779_v13, %v498_v2  ;;  %v784_v49 = vstv %s743_s14  ;;  %v266_v0 = vmul.f32 %v767_v33, %v500_v3 }
  0x4d   :  { %261 = vst [vmem:[#allocation7 + $0xa8] sm:$0xf] %v248_v6  ;;  %v249_v53 = vadd.f32 %v680_v46, %v236_v37  ;;  %v290_v54 = vadd.f32 %v278_v42, %v265_v7  ;;  %v279_v55 = vmul.f32 %v773_v30, %v502_v4  ;;  %v304_v1 = vmul.f32 %v779_v13, %v504_v5 }
  0x4e   :  { %v250_v58 = vadd.f32 %v680_v46, %v237_v43  ;;  %v267_v2 = vmul.f32 %v767_v33, %v510_v8  ;;  %v280_v59 = vmul.f32 %v773_v30, %v512_v9  ;;  %v305_v3 = vmul.f32 %v779_v13, %v514_v10 }
  0x4f   :  { %262 = vst [vmem:[#allocation7 + $0xb0] sm:$0xf] %v249_v53  ;;  %v315_v60 = vadd.f32 %v303_v44, %v290_v54  ;;  %v291_v61 = vadd.f32 %v279_v55, %v266_v0  ;;  %v268_v4 = vmul.f32 %v767_v33, %v524_v15  ;;  %v281_v5 = vmul.f32 %v773_v30, %v526_v16 }
  0x50   :  { %263 = vst [vmem:[#allocation7 + $0xb8] sm:$0xf] %v250_v58  ;;  %v292_v46 = vadd.f32 %v280_v59, %v267_v2  ;;  %v306_v8 = vmul.f32 %v779_v13, %v528_v17  ;;  %v269_v9 = vmul.f32 %v767_v33, %v538_v22  ;;  %v282_v10 = vmul.f32 %v773_v30, %v540_v23 }
  0x51   :  { %v328_v12 = vadd.f32 %v784_v49, %v315_v60  ;;  %v316_v18 = vadd.f32 %v304_v1, %v291_v61  ;;  %v293_v19 = vadd.f32 %v281_v5, %v268_v4  ;;  %v307_v15 = vmul.f32 %v779_v13, %v548_v28 }
  0x52   :  { %v317_v20 = vadd.f32 %v305_v3, %v292_v46  ;;  %v294_v16 = vadd.f32 %v282_v10, %v269_v9  ;;  %v270_v25 = vmul.f32 %v767_v33, %v550_v29  ;;  %v283_v17 = vmul.f32 %v773_v30, %v558_v34 }
  0x53   :  { %341 = vst [vmem:[#allocation7 + $0xc0] sm:$0xff] %v328_v12  ;;  %v329_v22 = vadd.f32 %v784_v49, %v316_v18  ;;  %v318_v14 = vadd.f32 %v306_v8, %v293_v19  ;;  %v308_v23 = vmul.f32 %v779_v13, %v564_v39  ;;  %v271_v26 = vmul.f32 %v767_v33, %v566_v40 }
  0x54   :  { %v330_v28 = vadd.f32 %v784_v49, %v317_v20  ;;  %v319_v27 = vadd.f32 %v307_v15, %v294_v16  ;;  %v295_v35 = vadd.f32 %v283_v17, %v270_v25  ;;  %v284_v29 = vmul.f32 %v773_v30, %v572_v45 }
  0x55   :  { %342 = vst [vmem:[#allocation7 + $0xc8] sm:$0xff] %v329_v22  ;;  %v331_v34 = vadd.f32 %v784_v49, %v318_v14  ;;  %v309_v36 = vmul.f32 %v779_v13, %v577_v50  ;;  %v272_v7 = vmul.f32 %v767_v33, %v579_v51  ;;  %v285_v39 = vmul.f32 %v773_v30, %v581_v52 }
  0x56   :  { %343 = vst [vmem:[#allocation7 + $0xd0] sm:$0xff] %v330_v28  ;;  %v332_v40 = vadd.f32 %v784_v49, %v319_v27  ;;  %v320_v6 = vadd.f32 %v308_v23, %v295_v35  ;;  %v296_v37 = vadd.f32 %v284_v29, %v271_v26  ;;  %v310_v45 = vmul.f32 %v779_v13, %v588_v57 }
  0x57   :  { %344 = vst [vmem:[#allocation7 + $0xd8] sm:$0xff] %v331_v34  ;;  %v297_v42 = vadd.f32 %v285_v39, %v272_v7  ;;  %v273_v43 = vmul.f32 %v767_v33, %v595_v62  ;;  %v286_v50 = vmul.f32 %v773_v30, %v597_v63  ;;  %v311_v51 = vmul.f32 %v779_v13, %v599_v11 }
  0x58   :  { %345 = vst [vmem:[#allocation7 + $0xe0] sm:$0xff] %v332_v40  ;;  %v333_v52 = vadd.f32 %v784_v49, %v320_v6  ;;  %v321_v44 = vadd.f32 %v309_v36, %v296_v37  ;;  %v274_v0 = vmul.f32 %v767_v33, %v608_v21  ;;  %v287_v57 = vmul.f32 %v773_v30, %v610_v24 }
  0x59   :  { %v322_v53 = vadd.f32 %v310_v45, %v297_v42  ;;  %v298_v54 = vadd.f32 %v286_v50, %v273_v43  ;;  %v312_v62 = vmul.f32 %v779_v13, %v617_v31  ;;  %v275_v63 = vmul.f32 %v767_v33, %v619_v32 }
  0x5a   :  { %346 = vst [vmem:[#allocation7 + $0xe8] sm:$0xff] %v333_v52  ;;  %v334_v11 = vadd.f32 %v784_v49, %v321_v44  ;;  %v299_v55 = vadd.f32 %v287_v57, %v274_v0  ;;  %v288_v1 = vmul.f32 %v773_v30, %v629_v38  ;;  %v313_v21 = vmul.f32 %v779_v13, %v631_v41 }
  0x5b   :  { %v335_v24 = vadd.f32 %v784_v49, %v322_v53  ;;  %v323_v58 = vadd.f32 %v311_v51, %v298_v54  ;;  %v276_v2 = vmul.f32 %v767_v33, %v640_v47  ;;  %v289_v31 = vmul.f32 %v773_v30, %v642_v48 }
  0x5c   :  { %347 = vst [vmem:[#allocation7 + $0xf0] sm:$0xff] %v334_v11  ;;  %v324_v32 = vadd.f32 %v312_v62, %v299_v55  ;;  %v300_v59 = vadd.f32 %v288_v1, %v275_v63  ;;  %v314_v3 = vmul.f32 %v779_v13, %v648_v56 }
  0x5d   :  { %348 = vst [vmem:[#allocation7 + $0xf8] sm:$0xff] %v335_v24  ;;  %v336_v38 = vadd.f32 %v784_v49, %v323_v58  ;;  %v301_v60 = vadd.f32 %v289_v31, %v276_v2 }
  0x5e   :  { %v337_v41 = vadd.f32 %v784_v49, %v324_v32  ;;  %v325_v61 = vadd.f32 %v313_v21, %v300_v59 }
  0x5f   :  { %349 = vst [vmem:[#allocation7 + $0x100] sm:$0xf] %v336_v38  ;;  %v326_v47 = vadd.f32 %v314_v3, %v301_v60 }
  0x60   :  { %350 = vst [vmem:[#allocation7 + $0x108] sm:$0xf] %v337_v41  ;;  %v338_v48 = vadd.f32 %v784_v49, %v325_v61 }
  0x61   :  { %v339_v33 = vadd.f32 %v784_v49, %v326_v47 }
  0x62   :  { %351 = vst [vmem:[#allocation7 + $0x110] sm:$0xf] %v338_v48 }
  0x63   :  { %352 = vst [vmem:[#allocation7 + $0x118] sm:$0xf] %v339_v33 }
  0x64   :  { %430 = shalt.err (!%p427_p1)
}
  0x65   :  { %s431_s20 = scalar_lea.hbm %s883_s2, 4608 }
  0x66   :  { %p432_p2 = scmp.ne.s32.totalorder %s883_s2, %s431_s20  ;;  %p435_p3 = scmp.lt.u32.totalorder %s431_s20, %s883_s2 }
  0x68   :  { %p437_p4 = pnand %p435_p3, %p432_p2 }
  0x6a   :  { %440 = shalt.err (!%p437_p4)
}
  0x6b   :  { %364 = dma.vmem_to_hbm [thread:$0]  %s359_s16, 4608, %s883_s2, [#allocation4], %s449_s0, %s449_s0, %s450_s29  }
  0x6c   :  { %445 = dma.done.wait [#allocation4], 4608  }
  0x6d   :  { %446 = vsyncadd [#allocation4], 4294962688 }
  0x6e   :  { %368 = vsyncpa [#allocation3], 1 }
  0x6f   :  { %369 = vsyncpa [#allocation4], 1 }
  0x70   :  { %370 = vsyncpa [#allocation5], 1 }

</bundles_post_ra>
